<compile_context>
chip_gen: v6e
topology: v6e:2x2x1
jax: 0.10.0
libtpu: 0.0.40
codegen_flags: <defaults>
</compile_context>

<pallas_src>
import functools

import jax
import jax.numpy as jnp
from jax.experimental import pallas as pl
from jax.experimental.pallas import tpu as pltpu


def _gcn_kernel(g_ref, x_ref, w_ref, b_ref, o_ref, y_ref, *,
                cheb_k, batch, h_out, row_tile):
    """One node-row tile of the output per grid step.

    g_ref : [K, tN, N]  row-tile of every support matrix (streamed)
    x_ref : [B, N, C]   resident graph signal
    w_ref : [K, C, H]   resident weights (reshaped in the wrapper)
    b_ref : [1, B*H]    bias tiled across batch (matches output lane layout)
    o_ref : [tN, B*H]   lane-dense output slab for this row tile
    y_ref : [N, B*H]    VMEM scratch: x @ W_k, batch packed into lanes
    """
    bh = batch * h_out
    # Start the accumulator from the bias (single broadcast, hoisted).
    acc = jnp.broadcast_to(b_ref[...], (row_tile, bh)).astype(jnp.float32)

    for k in range(cheb_k):
        w_k = w_ref[k]  # [C, H], clean leading-axis index (free)
        # Projection y_k[:, b*H:(b+1)*H] = x[b] @ W_k  (tiny matmuls, lane-packed
        # into the scratch so the big matmul below is lane-dense).
        for b in range(batch):
            y_ref[:, b * h_out:(b + 1) * h_out] = jnp.dot(
                x_ref[b], w_k, preferred_element_type=jnp.float32
            ).astype(y_ref.dtype)
        # Dominant matmul: [tN, N] @ [N, B*H], f32 accumulate — no concat.
        acc = acc + jnp.dot(g_ref[k], y_ref[...],
                            preferred_element_type=jnp.float32)

    o_ref[...] = acc.astype(o_ref.dtype)


def _pick_row_tile(n):
    """Largest multiple-of-8 divisor of n that is <= 512 (else full n)."""
    if n <= 512:
        return n
    for cand in (512, 384, 256, 128, 64, 32, 16, 8):
        if n % cand == 0:
            return cand
    return n


def gcn_forward(x, G, W, b, *, row_tile=None):
    """x: [B, N, C] f32, G: [K, N, N] f32, W: [K*C, H] f32, b: [H] f32."""
    B, N, C = x.shape
    K = G.shape[0]
    H = W.shape[1]
    assert W.shape[0] == K * C

    if row_tile is None:
        row_tile = _pick_row_tile(N)
    assert N % row_tile == 0

    # Layout plumbing (XLA side): k-major weight blocks and a batch-tiled bias
    # whose lane layout matches the [N, B*H] output slab.
    W3 = W.reshape(K, C, H)                   # W3[k, c, h] == W[k*C + c, h]
    bt = jnp.tile(b, B).reshape(1, B * H)     # bt[0, b*H + h] == b[h]

    kernel = functools.partial(
        _gcn_kernel, cheb_k=K, batch=B, h_out=H, row_tile=row_tile)

    # Scoped-VMEM budget: double-buffered blocks + scratch, clamped to a value
    # that is safe on v5e/v6e (128 MiB physical) and v7x (64 MiB physical).
    est = 4 * (2 * (K * row_tile * N + B * N * C + K * C * H + B * H
                    + row_tile * B * H) + N * B * H)
    vmem_limit = int(min(max(est + (4 << 20), 32 << 20), 48 << 20))

    out_t = pl.pallas_call(
        kernel,
        out_shape=jax.ShapeDtypeStruct((N, B * H), x.dtype),
        grid_spec=pltpu.PrefetchScalarGridSpec(
            num_scalar_prefetch=0,
            grid=(N // row_tile,),
            in_specs=[
                pl.BlockSpec((K, row_tile, N), lambda i: (0, i, 0)),  # G rows
                pl.BlockSpec((B, N, C), lambda i: (0, 0, 0)),         # x resident
                pl.BlockSpec((K, C, H), lambda i: (0, 0, 0)),         # W resident
                pl.BlockSpec((1, B * H), lambda i: (0, 0)),           # bias
            ],
            out_specs=pl.BlockSpec((row_tile, B * H), lambda i: (i, 0)),
            scratch_shapes=[pltpu.VMEM((N, B * H), jnp.float32)],
        ),
        compiler_params=pltpu.CompilerParams(
            dimension_semantics=("parallel",),
            vmem_limit_bytes=vmem_limit,
        ),
    )(G, x, W3, bt)

    # Un-pack the lane-dense slab [N, B*H] -> [B, N, H].
    return jnp.transpose(out_t.reshape(N, B, H), (1, 0, 2))
    # NOTE: for HBM/MXU-bound sizes, cast G / x / W to bfloat16 in this wrapper
    # (keep preferred_element_type=f32 in the kernel) to halve G traffic.


def gcn_reference(x, G, W, b):
    """Plain-JAX reference mirroring the PyTorch forward."""
    supports = [jnp.einsum("ij,bjp->bip", G[k], x) for k in range(G.shape[0])]
    support_cat = jnp.concatenate(supports, axis=-1)
    return jnp.einsum("bip,pq->biq", support_cat, W) + b


if __name__ == "__main__":
    # Module hyper-params (small, consistent with the forward signature)
    B, N, C, H, K = 2, 16, 4, 32, 3  # batch, nodes, dim_in, dim_out, cheb_k

    key = jax.random.PRNGKey(0)
    kx, kg, kw, kb = jax.random.split(key, 4)

    x = jax.random.normal(kx, (B, N, C), dtype=jnp.float32)
    G = jax.random.normal(kg, (K, N, N), dtype=jnp.float32)

    # Parameters: xavier_normal_(W) -> std = sqrt(2 / (fan_in + fan_out)); b = 0
    fan_in, fan_out = K * C, H
    w_std = (2.0 / (fan_in + fan_out)) ** 0.5
    W = w_std * jax.random.normal(kw, (K * C, H), dtype=jnp.float32)

    # Check both the module-init bias (zeros) and a nonzero bias path.
    for bias in (jnp.zeros((H,), dtype=jnp.float32),
                 0.1 * jax.random.normal(kb, (H,), dtype=jnp.float32)):
        out = jax.block_until_ready(gcn_forward(x, G, W, bias))
        ref = gcn_reference(x, G, W, bias)
        assert out.shape == (B, N, H)
        assert jnp.allclose(out, ref, atol=1e-4, rtol=1e-4), "mismatch vs reference"

    print("KERNEL_OK")
</pallas_src>

<mosaic_0001>
module attributes {stable_mosaic.version = 11 : i64} {
  func.func @_gcn_kernel(%arg0: i32, %arg1: memref<3x16x16xf32, #tpu.memory_space<vmem>>, %arg2: memref<2x16x4xf32, #tpu.memory_space<vmem>>, %arg3: memref<3x4x32xf32, #tpu.memory_space<vmem>>, %arg4: memref<1x64xf32, #tpu.memory_space<vmem>>, %arg5: memref<16x64xf32, #tpu.memory_space<vmem>>, %arg6: memref<16x64xf32, #tpu.memory_space<vmem>>) attributes {dimension_semantics = [#tpu.dimension_semantics<parallel>], iteration_bounds = array<i64: 1>, scalar_prefetch = 0 : i64, scratch_operands = 1 : i64, tpu.core_type = #tpu.core_type<tc>, window_params = [{transform_indices = @transform_0, window_bounds = array<i64: 3, 16, 16>}, {pipeline_mode = #tpu.pipeline_mode<synchronous>, transform_indices = @transform_1, window_bounds = array<i64: 2, 16, 4>}, {pipeline_mode = #tpu.pipeline_mode<synchronous>, transform_indices = @transform_2, window_bounds = array<i64: 3, 4, 32>}, {pipeline_mode = #tpu.pipeline_mode<synchronous>, transform_indices = @transform_3, window_bounds = array<i64: 1, 64>}, {transform_indices = @transform_4, window_bounds = array<i64: 16, 64>}]} {
    %c0 = arith.constant 0 : index
    %c0_0 = arith.constant 0 : index
    %0 = vector.load %arg4[%c0, %c0_0] : memref<1x64xf32, #tpu.memory_space<vmem>>, vector<1x64xf32>
    %1 = vector.shape_cast %0 : vector<1x64xf32> to vector<1x64xf32>
    %2 = vector.broadcast %1 : vector<1x64xf32> to vector<16x64xf32>
    %c0_1 = arith.constant 0 : index
    %c0_2 = arith.constant 0 : index
    %c0_3 = arith.constant 0 : index
    %3 = vector.load %arg3[%c0_1, %c0_2, %c0_3] : memref<3x4x32xf32, #tpu.memory_space<vmem>>, vector<1x4x32xf32>
    %4 = vector.shape_cast %3 : vector<1x4x32xf32> to vector<4x32xf32>
    %c0_4 = arith.constant 0 : index
    %c0_5 = arith.constant 0 : index
    %c0_6 = arith.constant 0 : index
    %5 = vector.load %arg2[%c0_4, %c0_5, %c0_6] : memref<2x16x4xf32, #tpu.memory_space<vmem>>, vector<1x16x4xf32>
    %6 = vector.shape_cast %5 : vector<1x16x4xf32> to vector<16x4xf32>
    %cst = arith.constant dense<0.000000e+00> : vector<16x32xf32>
    %7 = tpu.matmul %6, %4, %cst {dimension_numbers = #tpu.dot_dimension_numbers<[1], [0], [0], [1], [0, 0, 1, 1], [], []>} : vector<16x4xf32>, vector<4x32xf32>, vector<16x32xf32> -> vector<16x32xf32>
    %c0_7 = arith.constant 0 : index
    %c0_8 = arith.constant 0 : index
    %8 = vector.load %arg6[%c0_7, %c0_8] : memref<16x64xf32, #tpu.memory_space<vmem>>, vector<16x32xf32>
    tpu.vector_store %arg6[%c0_7, %c0_8], %7 {strides = array<i32>} : memref<16x64xf32, #tpu.memory_space<vmem>>, vector<16x32xf32>,
    %c1 = arith.constant 1 : index
    %c0_9 = arith.constant 0 : index
    %c0_10 = arith.constant 0 : index
    %9 = vector.load %arg2[%c1, %c0_9, %c0_10] : memref<2x16x4xf32, #tpu.memory_space<vmem>>, vector<1x16x4xf32>
    %10 = vector.shape_cast %9 : vector<1x16x4xf32> to vector<16x4xf32>
    %cst_11 = arith.constant dense<0.000000e+00> : vector<16x32xf32>
    %11 = tpu.matmul %10, %4, %cst_11 {dimension_numbers = #tpu.dot_dimension_numbers<[1], [0], [0], [1], [0, 0, 1, 1], [], []>} : vector<16x4xf32>, vector<4x32xf32>, vector<16x32xf32> -> vector<16x32xf32>
    %c0_12 = arith.constant 0 : index
    %c32 = arith.constant 32 : index
    %12 = vector.load %arg6[%c0_12, %c32] : memref<16x64xf32, #tpu.memory_space<vmem>>, vector<16x32xf32>
    tpu.vector_store %arg6[%c0_12, %c32], %11 {strides = array<i32>} : memref<16x64xf32, #tpu.memory_space<vmem>>, vector<16x32xf32>,
    %c0_13 = arith.constant 0 : index
    %c0_14 = arith.constant 0 : index
    %c0_15 = arith.constant 0 : index
    %13 = vector.load %arg1[%c0_13, %c0_14, %c0_15] : memref<3x16x16xf32, #tpu.memory_space<vmem>>, vector<1x16x16xf32>
    %14 = vector.shape_cast %13 : vector<1x16x16xf32> to vector<16x16xf32>
    %c0_16 = arith.constant 0 : index
    %c0_17 = arith.constant 0 : index
    %15 = vector.load %arg6[%c0_16, %c0_17] : memref<16x64xf32, #tpu.memory_space<vmem>>, vector<16x64xf32>
    %cst_18 = arith.constant dense<0.000000e+00> : vector<16x64xf32>
    %16 = tpu.matmul %14, %15, %cst_18 {dimension_numbers = #tpu.dot_dimension_numbers<[1], [0], [0], [1], [0, 0, 1, 1], [], []>} : vector<16x16xf32>, vector<16x64xf32>, vector<16x64xf32> -> vector<16x64xf32>
    %17 = arith.addf %2, %16 : vector<16x64xf32>
    %c1_19 = arith.constant 1 : index
    %c0_20 = arith.constant 0 : index
    %c0_21 = arith.constant 0 : index
    %18 = vector.load %arg3[%c1_19, %c0_20, %c0_21] : memref<3x4x32xf32, #tpu.memory_space<vmem>>, vector<1x4x32xf32>
    %19 = vector.shape_cast %18 : vector<1x4x32xf32> to vector<4x32xf32>
    %c0_22 = arith.constant 0 : index
    %c0_23 = arith.constant 0 : index
    %c0_24 = arith.constant 0 : index
    %20 = vector.load %arg2[%c0_22, %c0_23, %c0_24] : memref<2x16x4xf32, #tpu.memory_space<vmem>>, vector<1x16x4xf32>
    %21 = vector.shape_cast %20 : vector<1x16x4xf32> to vector<16x4xf32>
    %cst_25 = arith.constant dense<0.000000e+00> : vector<16x32xf32>
    %22 = tpu.matmul %21, %19, %cst_25 {dimension_numbers = #tpu.dot_dimension_numbers<[1], [0], [0], [1], [0, 0, 1, 1], [], []>} : vector<16x4xf32>, vector<4x32xf32>, vector<16x32xf32> -> vector<16x32xf32>
    %c0_26 = arith.constant 0 : index
    %c0_27 = arith.constant 0 : index
    %23 = vector.load %arg6[%c0_26, %c0_27] : memref<16x64xf32, #tpu.memory_space<vmem>>, vector<16x32xf32>
    tpu.vector_store %arg6[%c0_26, %c0_27], %22 {strides = array<i32>} : memref<16x64xf32, #tpu.memory_space<vmem>>, vector<16x32xf32>,
    %c1_28 = arith.constant 1 : index
    %c0_29 = arith.constant 0 : index
    %c0_30 = arith.constant 0 : index
    %24 = vector.load %arg2[%c1_28, %c0_29, %c0_30] : memref<2x16x4xf32, #tpu.memory_space<vmem>>, vector<1x16x4xf32>
    %25 = vector.shape_cast %24 : vector<1x16x4xf32> to vector<16x4xf32>
    %cst_31 = arith.constant dense<0.000000e+00> : vector<16x32xf32>
    %26 = tpu.matmul %25, %19, %cst_31 {dimension_numbers = #tpu.dot_dimension_numbers<[1], [0], [0], [1], [0, 0, 1, 1], [], []>} : vector<16x4xf32>, vector<4x32xf32>, vector<16x32xf32> -> vector<16x32xf32>
    %c0_32 = arith.constant 0 : index
    %c32_33 = arith.constant 32 : index
    %27 = vector.load %arg6[%c0_32, %c32_33] : memref<16x64xf32, #tpu.memory_space<vmem>>, vector<16x32xf32>
    tpu.vector_store %arg6[%c0_32, %c32_33], %26 {strides = array<i32>} : memref<16x64xf32, #tpu.memory_space<vmem>>, vector<16x32xf32>,
    %c1_34 = arith.constant 1 : index
    %c0_35 = arith.constant 0 : index
    %c0_36 = arith.constant 0 : index
    %28 = vector.load %arg1[%c1_34, %c0_35, %c0_36] : memref<3x16x16xf32, #tpu.memory_space<vmem>>, vector<1x16x16xf32>
    %29 = vector.shape_cast %28 : vector<1x16x16xf32> to vector<16x16xf32>
    %c0_37 = arith.constant 0 : index
    %c0_38 = arith.constant 0 : index
    %30 = vector.load %arg6[%c0_37, %c0_38] : memref<16x64xf32, #tpu.memory_space<vmem>>, vector<16x64xf32>
    %cst_39 = arith.constant dense<0.000000e+00> : vector<16x64xf32>
    %31 = tpu.matmul %29, %30, %cst_39 {dimension_numbers = #tpu.dot_dimension_numbers<[1], [0], [0], [1], [0, 0, 1, 1], [], []>} : vector<16x16xf32>, vector<16x64xf32>, vector<16x64xf32> -> vector<16x64xf32>
    %32 = arith.addf %17, %31 : vector<16x64xf32>
    %c2 = arith.constant 2 : index
    %c0_40 = arith.constant 0 : index
    %c0_41 = arith.constant 0 : index
    %33 = vector.load %arg3[%c2, %c0_40, %c0_41] : memref<3x4x32xf32, #tpu.memory_space<vmem>>, vector<1x4x32xf32>
    %34 = vector.shape_cast %33 : vector<1x4x32xf32> to vector<4x32xf32>
    %c0_42 = arith.constant 0 : index
    %c0_43 = arith.constant 0 : index
    %c0_44 = arith.constant 0 : index
    %35 = vector.load %arg2[%c0_42, %c0_43, %c0_44] : memref<2x16x4xf32, #tpu.memory_space<vmem>>, vector<1x16x4xf32>
    %36 = vector.shape_cast %35 : vector<1x16x4xf32> to vector<16x4xf32>
    %cst_45 = arith.constant dense<0.000000e+00> : vector<16x32xf32>
    %37 = tpu.matmul %36, %34, %cst_45 {dimension_numbers = #tpu.dot_dimension_numbers<[1], [0], [0], [1], [0, 0, 1, 1], [], []>} : vector<16x4xf32>, vector<4x32xf32>, vector<16x32xf32> -> vector<16x32xf32>
    %c0_46 = arith.constant 0 : index
    %c0_47 = arith.constant 0 : index
    %38 = vector.load %arg6[%c0_46, %c0_47] : memref<16x64xf32, #tpu.memory_space<vmem>>, vector<16x32xf32>
    tpu.vector_store %arg6[%c0_46, %c0_47], %37 {strides = array<i32>} : memref<16x64xf32, #tpu.memory_space<vmem>>, vector<16x32xf32>,
    %c1_48 = arith.constant 1 : index
    %c0_49 = arith.constant 0 : index
    %c0_50 = arith.constant 0 : index
    %39 = vector.load %arg2[%c1_48, %c0_49, %c0_50] : memref<2x16x4xf32, #tpu.memory_space<vmem>>, vector<1x16x4xf32>
    %40 = vector.shape_cast %39 : vector<1x16x4xf32> to vector<16x4xf32>
    %cst_51 = arith.constant dense<0.000000e+00> : vector<16x32xf32>
    %41 = tpu.matmul %40, %34, %cst_51 {dimension_numbers = #tpu.dot_dimension_numbers<[1], [0], [0], [1], [0, 0, 1, 1], [], []>} : vector<16x4xf32>, vector<4x32xf32>, vector<16x32xf32> -> vector<16x32xf32>
    %c0_52 = arith.constant 0 : index
    %c32_53 = arith.constant 32 : index
    %42 = vector.load %arg6[%c0_52, %c32_53] : memref<16x64xf32, #tpu.memory_space<vmem>>, vector<16x32xf32>
    tpu.vector_store %arg6[%c0_52, %c32_53], %41 {strides = array<i32>} : memref<16x64xf32, #tpu.memory_space<vmem>>, vector<16x32xf32>,
    %c2_54 = arith.constant 2 : index
    %c0_55 = arith.constant 0 : index
    %c0_56 = arith.constant 0 : index
    %43 = vector.load %arg1[%c2_54, %c0_55, %c0_56] : memref<3x16x16xf32, #tpu.memory_space<vmem>>, vector<1x16x16xf32>
    %44 = vector.shape_cast %43 : vector<1x16x16xf32> to vector<16x16xf32>
    %c0_57 = arith.constant 0 : index
    %c0_58 = arith.constant 0 : index
    %45 = vector.load %arg6[%c0_57, %c0_58] : memref<16x64xf32, #tpu.memory_space<vmem>>, vector<16x64xf32>
    %cst_59 = arith.constant dense<0.000000e+00> : vector<16x64xf32>
    %46 = tpu.matmul %44, %45, %cst_59 {dimension_numbers = #tpu.dot_dimension_numbers<[1], [0], [0], [1], [0, 0, 1, 1], [], []>} : vector<16x16xf32>, vector<16x64xf32>, vector<16x64xf32> -> vector<16x64xf32>
    %47 = arith.addf %32, %46 : vector<16x64xf32>
    %c0_60 = arith.constant 0 : index
    %c0_61 = arith.constant 0 : index
    %48 = vector.load %arg5[%c0_60, %c0_61] : memref<16x64xf32, #tpu.memory_space<vmem>>, vector<16x64xf32>
    tpu.vector_store %arg5[%c0_60, %c0_61], %47 {strides = array<i32>} : memref<16x64xf32, #tpu.memory_space<vmem>>, vector<16x64xf32>,
    return
  }
  func.func @transform_0(%arg0: i32) -> (i32, i32, i32) {
    %c0_i32 = arith.constant 0 : i32
    %c0_i32_0 = arith.constant 0 : i32
    %c0_i32_1 = arith.constant 0 : i32
    return %c0_i32, %arg0, %c0_i32_0 : i32, i32, i32
  }
  func.func @transform_1(%arg0: i32) -> (i32, i32, i32) {
    %c0_i32 = arith.constant 0 : i32
    %c0_i32_0 = arith.constant 0 : i32
    %c0_i32_1 = arith.constant 0 : i32
    %c0_i32_2 = arith.constant 0 : i32
    return %c0_i32, %c0_i32_0, %c0_i32_1 : i32, i32, i32
  }
  func.func @transform_2(%arg0: i32) -> (i32, i32, i32) {
    %c0_i32 = arith.constant 0 : i32
    %c0_i32_0 = arith.constant 0 : i32
    %c0_i32_1 = arith.constant 0 : i32
    %c0_i32_2 = arith.constant 0 : i32
    return %c0_i32, %c0_i32_0, %c0_i32_1 : i32, i32, i32
  }
  func.func @transform_3(%arg0: i32) -> (i32, i32) {
    %c0_i32 = arith.constant 0 : i32
    %c0_i32_0 = arith.constant 0 : i32
    %c0_i32_1 = arith.constant 0 : i32
    return %c0_i32, %c0_i32_0 : i32, i32
  }
  func.func @transform_4(%arg0: i32) -> (i32, i32) {
    %c0_i32 = arith.constant 0 : i32
    %c0_i32_0 = arith.constant 0 : i32
    return %arg0, %c0_i32 : i32, i32
  }
}

</mosaic_0001>

<bundles_post_ra>
// kernel: tpu_custom_call.1
= control target key start
LH: loop header
LB: loop body
LE: loop exit
PB: predicated region body
PF: predicated region fallthrough
CT: control target
= control target key end

     0   :  { %9 = vsyncpa [#allocation4], 0  ;;  %s1163_s0 = inlined_call_operand.hbm [shape: f32[3,16,16], index: 0, kind: input, shape index: {}]   ;;  %s1164_s1 = inlined_call_operand.vmem [shape: f32[2,16,4], index: 1, kind: input, shape index: {}]   ;;  %s1165_s2 = inlined_call_operand.vmem [shape: f32[3,4,32], index: 2, kind: input, shape index: {}]   ;;  %s1166_s3 = inlined_call_operand.vmem [shape: f32[1,64], index: 3, kind: input, shape index: {}]   ;;  %s1167_s4 = inlined_call_operand.hbm [shape: f32[16,64], index: 4, kind: output, shape index: {}]  }
   0x1   :  { %10 = vsyncpa [#allocation5], 0  ;;  %s1039_s15 = smov [#allocation3]  }
   0x2   :  { %s16_s16 = sshll.u32 %s1039_s15, 4  ;;  %s17_s16 = int_to_ptr.vmem [resolvable:$true] %s16_s16 }
   0x3   :  { %s1003_s17 = scalar_lea.vmem %s17_s16, 768  ;;  %p1008_p1 = scmp.lt.s32.totalorder %s17_s16, %s17_s16 }
   0x4   :  { %p1004_p0 = scmp.ne.s32.totalorder %s17_s16, %s1003_s17  ;;  %p1009_p2 = scmp.lt.s32.totalorder %s1003_s17, %s1003_s17 }
   0x6   :  { %p1010_p3 = por %p1009_p2, %p1008_p1 }
   0x8   :  { %p1011_p4 = pnand %p1010_p3, %p1004_p0 }
   0xa   :  { %1014 = shalt.err (!%p1011_p4)
}
   0xb   :  { %s1040_s18 = smov 128   ;;  %s1041_s19 = smov 8  }
   0xc   :  { %22 = dma.hbm_to_vmem [thread:$0]  %s1163_s0, 768, %s17_s16, [#allocation4], %s1040_s18, %s1040_s18, %s1041_s19  }
   0xd   :  { %1035 = dma.done.wait [#allocation4], 768  }
   0xe   :  { %1036 = vsyncadd [#allocation4], 4294966528  ;;  %vm49_vm0 = vcmask 1043456   ;;  %vm42_vm1 = vcmask 31744   ;;  %v39_v0 = vld [vmem:[%s1165_s2] sm:$0xf] }
   0xf   :  { %v1081_v1 = vld [vmem:[%s1164_s1 + $0x10] sm:$0xff]  ;;  %v1086_v2 = vld [vmem:[%s1164_s1 + $0x18] sm:$0xff]  ;;  %944 = vmatprep.subr.msk.mxu1 %vm49_vm0, %v39_v0  ;;  %v40_v3 = vld [vmem:[%s1164_s1] sm:$0xff]  ;;  %939 = vmatprep.subr.msk.mxu0 %vm49_vm0, %v39_v0  ;;  %vm128_vm2 = vcmask 261120   ;;  %vm230_vm3 = vcmask 130048   ;;  %s1042_s5 = smov 32  }
  0x10   :  { %946 = vmatprep.mubr.msk.f32.mxu1 %vm42_vm1, %v1081_v1  ;;  %945 = vmatpush3.msk.msra.mxu1 %vm49_vm0, %v39_v0  ;;  %v41_v4 = vld [vmem:[%s1164_s1 + $0x8] sm:$0xff]  ;;  %v226_v6 = vld [vmem:[#allocation3] sm:$0xff]  ;;  %v887_v8 = vld [vmem:[%s1165_s2 + $0x4] sm:$0xf]  ;;  %vm223_vm4 = vcmask 523520   ;;  %vm856_vm5 = vcmask 523264  }
  0x11   :  { %947 = vmatmul.mubr.msk.f32.vlgmr.msra.gmra.mxu1 %vm42_vm1, %v1086_v2  ;;  %940 = vmatpush3.msk.msra.mxu0 %vm49_vm0, %v39_v0  ;;  %v227_v15 = vld [vmem:[#allocation3 + $0x8] sm:$0xff]  ;;  %v498_v21 = vld [vmem:[#allocation3 + $0x10] sm:$0xff]  ;;  %v898_v22 = vld [vmem:[%s1165_s2 + $0x8] sm:$0xf] }
  0x12   :  { %941 = vmatprep.mubr.msk.f32.mxu0 %vm42_vm1, %v40_v3  ;;  %958 = vmatprep.mubr.msk.f32.mxu1 %vm42_vm1, %v40_v3  ;;  %v499_v28 = vld [vmem:[#allocation3 + $0x18] sm:$0xff]  ;;  %v876_v31 = vld [vmem:[%s1166_s3] ss:$0 sm:$0xff]  ;;  %v769_v37 = vld [vmem:[#allocation3 + $0x20] sm:$0xff]  ;;  %s1043_s3 = smov [#allocation6]  }
  0x13   :  { %942 = vmatmul.mubr.msk.f32.vlgmr.msra.gmra.mxu0 %vm42_vm1, %v41_v4  ;;  %956 = vmatprep.subr.msk.mxu1 %vm49_vm0, %v887_v8  ;;  %v770_v45 = vld [vmem:[#allocation3 + $0x28] sm:$0xff]  ;;  %s864_s10 = sshll.u32 %s1043_s3, 4  ;;  %s865_s10 = int_to_ptr.vmem [resolvable:$true] %s864_s10 }
  0x14   :  { %953 = vmatprep.mubr.msk.f32.mxu0 %vm230_vm3, %v226_v6  ;;  %957 = vmatpush3.msk.msra.mxu1 %vm49_vm0, %v887_v8  ;;  %s1015_s11 = scalar_lea.vmem %s865_s10, 256  ;;  %p1020_p6 = scmp.lt.s32.totalorder %s865_s10, %s865_s10 }
  0x15   :  { %959 = vmatmul.mubr.msk.f32.vlgmr.msra.gmra.mxu1 %vm42_vm1, %v41_v4  ;;  %p1016_p5 = scmp.ne.s32.totalorder %s865_s10, %s1015_s11  ;;  %p1021_p7 = scmp.lt.s32.totalorder %s1015_s11, %s1015_s11 }
  0x16   :  { %970 = vmatprep.mubr.msk.f32.mxu1 %vm230_vm3, %v498_v21 }
  0x17   :  { %p1022_p8 = por %p1021_p7, %p1020_p6 }
  0x19   :  { %p1023_p9 = pnand %p1022_p8, %p1016_p5 }
  0xd1   :  { %v948_v5 = vpop.f32.mrf.mxu1 }
  0xd2   :  { %219 = vrot.lane.b32.xlu0 %v948_v5, %s1042_s5 }
  0xd3   :  { %v943_v7 = vpop.f32.mrf.mxu0  ;;  %v206_v9 = vpop.f32.mrf.mxu1 }
  0xd4   :  { %130 = vst.msk [vmem:[#allocation2 + $0x8] sm:$0xff] %vm128_vm2, %v943_v7 }
  0xd5   :  { %v119_v10 = vpop.f32.mrf.mxu0  ;;  %v960_v16 = vpop.f32.mrf.mxu1 }
  0xd6   :  { %217 = vrot.lane.b32.xlu0 %v206_v9, %s1042_s5  ;;  %129 = vst.msk [vmem:[#allocation2] sm:$0xff] %vm128_vm2, %v119_v10 }
  0xd7   :  { %v393_v17 = vpop.f32.mrf.mxu1 }
 0x144   :  { %v220_v11 = vpop.permute.xlu0 %219 }
 0x145   :  { %225 = vst.msk [vmem:[#allocation2 + $0x8] sm:$0xff] %vm223_vm4, %v220_v11 }
 0x148   :  { %v218_v12 = vpop.permute.xlu0 %217 }
 0x149   :  { %224 = vst.msk [vmem:[#allocation2] sm:$0xff] %vm223_vm4, %v218_v12 }
 0x14c   :  { %v229_v13 = vld [vmem:[#allocation2 + $0x8] sm:$0xff] }
 0x14d   :  { %949 = vmatprep.subr.mxu0 %v229_v13  ;;  %403 = vst.msk [vmem:[#allocation2 + $0x8] sm:$0xff] %vm128_vm2, %v960_v16 }
 0x14e   :  { %950 = vmatpush3.msra.mxu0 %v229_v13 }
 0x150   :  { %v228_v14 = vld [vmem:[#allocation2] sm:$0xff] }
 0x151   :  { %951 = vmatprep.subr.mxu0 %v228_v14  ;;  %402 = vst.msk [vmem:[#allocation2] sm:$0xff] %vm128_vm2, %v393_v17 }
 0x152   :  { %952 = vmatpush3.msra.mxu0 %v228_v14 }
 0x153   :  { %954 = vmatmul.mubr.msk.f32.vlgmr.msra.gmra.mxu0 %vm230_vm3, %v227_v15  ;;  %961 = vmatprep.subr.msk.mxu0 %vm49_vm0, %v887_v8 }
 0x154   :  { %962 = vmatpush3.msk.msra.mxu0 %vm49_vm0, %v887_v8  ;;  %963 = vmatprep.mubr.msk.f32.mxu0 %vm42_vm1, %v1081_v1 }
 0x155   :  { %973 = vmatprep.subr.msk.mxu0 %vm49_vm0, %v898_v22 }
 0x157   :  { %964 = vmatmul.mubr.msk.f32.vlgmr.msra.gmra.mxu0 %vm42_vm1, %v1086_v2 }
 0x158   :  { %975 = vmatprep.mubr.msk.f32.mxu0 %vm42_vm1, %v40_v3  ;;  %974 = vmatpush3.msk.msra.mxu0 %vm49_vm0, %v898_v22 }
 0x15b   :  { %976 = vmatmul.mubr.msk.f32.vlgmr.msra.gmra.mxu0 %vm42_vm1, %v41_v4 }
 0x15c   :  { %987 = vmatprep.mubr.msk.f32.mxu0 %vm230_vm3, %v769_v37 }
 0x213   :  { %v955_v18 = vpop.f32.mrf.mxu0 }
 0x214   :  { %v313_v32 = vadd.f32 %v955_v18, %v876_v31 }
 0x215   :  { %v303_v19 = vpop.f32.mrf.mxu0 }
 0x216   :  { %v312_v34 = vadd.f32 %v876_v31, %v303_v19 }
 0x217   :  { %v965_v20 = vpop.f32.mrf.mxu0 }
 0x218   :  { %491 = vrot.lane.b32.xlu1 %v965_v20, %s1042_s5 }
 0x219   :  { %v478_v23 = vpop.f32.mrf.mxu0 }
 0x21b   :  { %v977_v29 = vpop.f32.mrf.mxu0 }
 0x21c   :  { %489 = vrot.lane.b32.xlu1 %v478_v23, %s1042_s5 }
 0x21d   :  { %v664_v30 = vpop.f32.mrf.mxu0 }
 0x28a   :  { %v492_v24 = vpop.permute.xlu1 %491 }
 0x28b   :  { %496 = vst.msk [vmem:[#allocation2 + $0x8] sm:$0xff] %vm223_vm4, %v492_v24 }
 0x28e   :  { %v490_v25 = vpop.permute.xlu1 %489 }
 0x28f   :  { %495 = vst.msk [vmem:[#allocation2] sm:$0xff] %vm223_vm4, %v490_v25 }
 0x292   :  { %v501_v26 = vld [vmem:[#allocation2 + $0x8] sm:$0xff] }
 0x293   :  { %966 = vmatprep.subr.mxu1 %v501_v26  ;;  %674 = vst.msk [vmem:[#allocation2 + $0x8] sm:$0xff] %vm128_vm2, %v977_v29 }
 0x294   :  { %967 = vmatpush3.msra.mxu1 %v501_v26 }
 0x296   :  { %v500_v27 = vld [vmem:[#allocation2] sm:$0xff] }
 0x297   :  { %968 = vmatprep.subr.mxu1 %v500_v27  ;;  %673 = vst.msk [vmem:[#allocation2] sm:$0xff] %vm128_vm2, %v664_v30 }
 0x298   :  { %969 = vmatpush3.msra.mxu1 %v500_v27 }
 0x299   :  { %971 = vmatmul.mubr.msk.f32.vlgmr.msra.gmra.mxu1 %vm230_vm3, %v499_v28  ;;  %978 = vmatprep.subr.msk.mxu1 %vm49_vm0, %v898_v22 }
 0x29a   :  { %979 = vmatpush3.msk.msra.mxu1 %vm49_vm0, %v898_v22  ;;  %980 = vmatprep.mubr.msk.f32.mxu1 %vm42_vm1, %v1081_v1 }
 0x29d   :  { %981 = vmatmul.mubr.msk.f32.vlgmr.msra.gmra.mxu1 %vm42_vm1, %v1086_v2 }
 0x359   :  { %v972_v33 = vpop.f32.mrf.mxu1 }
 0x35a   :  { %v584_v35 = vadd.f32 %v972_v33, %v313_v32 }
 0x35b   :  { %v574_v36 = vpop.f32.mrf.mxu1 }
 0x35c   :  { %v583_v38 = vadd.f32 %v574_v36, %v312_v34 }
 0x35d   :  { %v982_v39 = vpop.f32.mrf.mxu1 }
 0x35e   :  { %762 = vrot.lane.b32.xlu0 %v982_v39, %s1042_s5 }
 0x35f   :  { %v749_v40 = vpop.f32.mrf.mxu1 }
 0x360   :  { %760 = vrot.lane.b32.xlu1 %v749_v40, %s1042_s5 }
 0x3d0   :  { %v763_v41 = vpop.permute.xlu0 %762 }
 0x3d1   :  { %767 = vst.msk [vmem:[#allocation2 + $0x8] sm:$0xff] %vm223_vm4, %v763_v41 }
 0x3d2   :  { %v761_v42 = vpop.permute.xlu1 %760 }
 0x3d3   :  { %766 = vst.msk [vmem:[#allocation2] sm:$0xff] %vm223_vm4, %v761_v42 }
 0x3d8   :  { %v772_v43 = vld [vmem:[#allocation2 + $0x8] sm:$0xff] }
 0x3d9   :  { %983 = vmatprep.subr.mxu0 %v772_v43 }
 0x3da   :  { %984 = vmatpush3.msra.mxu0 %v772_v43  ;;  %v771_v44 = vld [vmem:[#allocation2] sm:$0xff] }
 0x3db   :  { %985 = vmatprep.subr.mxu0 %v771_v44 }
 0x3dc   :  { %986 = vmatpush3.msra.mxu0 %v771_v44 }
 0x3dd   :  { %988 = vmatmul.mubr.msk.f32.vlgmr.msra.gmra.mxu0 %vm230_vm3, %v770_v45 }
 0x49d   :  { %v989_v46 = vpop.f32.mrf.mxu0 }
 0x49e   :  { %v855_v47 = vadd.f32 %v989_v46, %v584_v35 }
 0x49f   :  { %v845_v48 = vpop.f32.mrf.mxu0 }
 0x4a0   :  { %v854_v49 = vadd.f32 %v845_v48, %v583_v38  ;;  %858 = vst.msk [vmem:[#allocation6 + $0x8] sm:$0xff] %vm856_vm5, %v855_v47 }
 0x4a2   :  { %857 = vst.msk [vmem:[#allocation6] sm:$0xff] %vm856_vm5, %v854_v49 }
 0x4a3   :  { %1026 = shalt.err (!%p1023_p9)
}
 0x4a4   :  { %870 = dma.vmem_to_hbm [thread:$0]  %s865_s10, 256, %s1167_s4, [#allocation5], %s1040_s18, %s1040_s18, %s1041_s19  }
 0x4a5   :  { %1037 = dma.done.wait [#allocation5], 256  }
 0x4a6   :  { %1038 = vsyncadd [#allocation5], 4294967040 }
 0x4a7   :  { %874 = vsyncpa [#allocation4], 1 }
 0x4a8   :  { %875 = vsyncpa [#allocation5], 1 }

</bundles_post_ra>
